<compile_context>
chip_gen: v7x
topology: tpu7x:2x2x1
jax: 0.10.0
libtpu: 0.0.40
codegen_flags: <defaults>
</compile_context>

<pallas_src>
import math

import jax
import jax.numpy as jnp
import numpy as np
from jax.experimental import pallas as pl
from jax.experimental.pallas import tpu as pltpu


# --------------------------------------------------------------------------
# Pallas kernel: streaming multiply; mask arrives as int8 {0,1}, cast on VPU.
# --------------------------------------------------------------------------
def _gridmask_kernel(x_ref, m_ref, o_ref):
    # x_ref/o_ref: (tn, tc, thw) VMEM tile; m_ref: (tn, 1, thw) int8 keep-mask
    # broadcast over the channel (sublane) axis.
    o_ref[...] = x_ref[...] * m_ref[...].astype(x_ref.dtype)


# --------------------------------------------------------------------------
# Tiling heuristics.
# --------------------------------------------------------------------------
def _choose_tiles(n, c, hw, itemsize, target_bytes=2 << 20):
    """Pick (tn, tc, thw) targeting ~target_bytes per x block.

    Mosaic block rule: the last two block dims must each be a multiple of
    (8, 128) or equal the full array extent; ragged final blocks from
    pl.cdiv grids are handled by Pallas.
    """
    sample_bytes = c * hw * itemsize
    if sample_bytes <= target_bytes:
        # Coalesce several whole samples per grid step (batch-axis blocking).
        tn = max(1, min(n, target_bytes // sample_bytes))
        if n >= 2:
            tn = min(tn, pl.cdiv(n, 2))  # keep >=2 batch steps for 2-TC v7x
        return int(tn), c, hw
    # A single sample exceeds the target: tile the lane-dense flattened
    # spatial axis in multiples of 128 (ragged final block is fine).
    thw_cap = max(128, (target_bytes // (c * itemsize)) // 128 * 128)
    thw = min(thw_cap, pl.cdiv(hw, 128) * 128)
    if thw >= hw:
        thw = hw  # full extent is always a legal block shape
    if c * thw * itemsize <= 2 * target_bytes:
        return 1, c, int(thw)
    # Many channels: tile channels too, rounded to the dtype-native sublane
    # count. The channel axis is innermost in the grid so the mask block
    # stays resident across channel tiles.
    sub = max(8, 32 // itemsize)  # 8 f32 / 16 bf16 / 32 int8
    tc = max(sub, (target_bytes // (thw * itemsize)) // sub * sub)
    if tc >= c:
        tc = c
    return 1, int(tc), int(thw)


def _vmem_budget_bytes(tn, tc, thw, itemsize):
    """Scoped-VMEM request: double-buffered x in + out + sublane-padded mask."""
    x_blk = tn * tc * thw * itemsize
    # int8 mask block (tn, 1, thw): sublane dim 1 pads to the int8-native 32
    # sublanes, lane dim to a multiple of 128.
    m_blk = tn * 32 * (pl.cdiv(thw, 128) * 128)
    est = 2 * (2 * x_blk + m_blk) + (4 << 20)  # + headroom for compiler scratch
    return int(min(60 << 20, max(16 << 20, est)))


# --------------------------------------------------------------------------
# Wrapper-side mask construction (plain JAX, tiny vs. the image tensor).
# --------------------------------------------------------------------------
def make_gridmask_params(key, n, h, w, *, d1, d2, ratio, prob):
    """Deterministically draw the per-sample random quantities used by Grid."""
    assert d1 >= 1, "d1 must be >= 1 (d == 0 would divide by zero)"
    hh = math.ceil(math.sqrt(h * h + w * w))
    k_d, k_h, k_w, k_p = jax.random.split(key, 4)
    d = jax.random.randint(k_d, (n,), d1, d2, dtype=jnp.int32)
    st_h = jnp.floor(jax.random.uniform(k_h, (n,)) * d).astype(jnp.int32)
    st_w = jnp.floor(jax.random.uniform(k_w, (n,)) * d).astype(jnp.int32)
    l = jnp.ceil(d.astype(jnp.float32) * ratio).astype(jnp.int32)
    apply_ = (jax.random.uniform(k_p, (n,)) <= prob).astype(jnp.int32)
    off_h = jnp.full((n,), (hh - h) // 2, jnp.int32)
    off_w = jnp.full((n,), (hh - w) // 2, jnp.int32)
    pad = jnp.zeros((n,), jnp.int32)
    params = jnp.stack([apply_, d, st_h, st_w, l, off_h, off_w, pad], axis=1)
    return params, hh


def make_gridmask_mask(params, h, w, mode):
    """Build the (N, 1, H*W) int8 keep-mask from per-sample params.

    All integer div/mod work is O(N*(H+W)) 1-D stripe hits in plain JAX; the
    Pallas hot path only sees the finished {0,1} mask.
    """
    n = params.shape[0]
    apply_ = params[:, 0]
    d = params[:, 1]
    st_h = params[:, 2]
    st_w = params[:, 3]
    l = params[:, 4]
    off_h = params[:, 5]
    off_w = params[:, 6]

    rows = jnp.arange(h, dtype=jnp.int32)[None, :]  # (1, H)
    cols = jnp.arange(w, dtype=jnp.int32)[None, :]  # (1, W)
    row_hit = ((rows + off_h[:, None] - st_h[:, None] + d[:, None])
               % d[:, None]) < l[:, None]           # (N, H)
    col_hit = ((cols + off_w[:, None] - st_w[:, None] + d[:, None])
               % d[:, None]) < l[:, None]           # (N, W)

    keep = jnp.logical_not(row_hit[:, :, None] | col_hit[:, None, :])  # (N,H,W)
    if mode == 1:
        keep = jnp.logical_not(keep)
    # prob gate: samples not selected pass through untouched.
    keep = keep | (apply_ == 0)[:, None, None]
    return keep.astype(jnp.int8).reshape(n, 1, h * w)


# --------------------------------------------------------------------------
# Forward pass.
# --------------------------------------------------------------------------
def gridmask_forward(x, params, *, mode=0, target_bytes=2 << 20,
                     donate_input=False):
    """x: (N, C, H, W) float array. params: (N, 8) int32 per-sample params."""
    n, c, h, w = x.shape
    hw = h * w
    mask = make_gridmask_mask(params, h, w, mode)  # (N, 1, HW) int8
    xf = x.reshape(n, c, hw)                       # lane-dense view

    itemsize = x.dtype.itemsize
    tn, tc, thw = _choose_tiles(n, c, hw, itemsize, target_bytes)
    # Grid: batch, spatial, channel (channel innermost -> mask block index is
    # invariant on the fastest axis, so it is not re-fetched per channel tile).
    grid = (pl.cdiv(n, tn), pl.cdiv(hw, thw), pl.cdiv(c, tc))

    cost = pl.CostEstimate(
        flops=int(n * c * hw),
        transcendentals=0,
        bytes_accessed=int(2 * n * c * hw * itemsize + n * hw),
    )

    out = pl.pallas_call(
        _gridmask_kernel,
        out_shape=jax.ShapeDtypeStruct((n, c, hw), x.dtype),
        grid=grid,
        in_specs=[
            pl.BlockSpec((tn, tc, thw), lambda i, j, k: (i, k, j)),
            pl.BlockSpec((tn, 1, thw), lambda i, j, k: (i, 0, j)),
        ],
        out_specs=pl.BlockSpec((tn, tc, thw), lambda i, j, k: (i, k, j)),
        compiler_params=pltpu.CompilerParams(
            dimension_semantics=("parallel", "parallel", "parallel"),
            vmem_limit_bytes=_vmem_budget_bytes(tn, tc, thw, itemsize)),
        cost_estimate=cost,
        input_output_aliases={0: 0} if donate_input else {},
    )(xf, mask)
    return out.reshape(n, c, h, w)


# --------------------------------------------------------------------------
# Pure-numpy reference replicating the PyTorch Grid stripe loops.
# --------------------------------------------------------------------------
def _ref_gridmask(x, params, mode, hh):
    x = np.asarray(x)
    p = np.asarray(params)
    n, c, h, w = x.shape
    out = np.empty_like(x)
    for b in range(n):
        apply_, d, st_h, st_w, l, off_h, off_w, _ = [int(v) for v in p[b]]
        if not apply_:
            out[b] = x[b]
            continue
        mask = np.ones((hh, hh), np.float32)
        for i in range(-1, hh // d + 1):
            s = d * i + st_h
            t = s + l
            s = max(min(s, hh), 0)
            t = max(min(t, hh), 0)
            mask[s:t, :] = 0
        for i in range(-1, hh // d + 1):
            s = d * i + st_w
            t = s + l
            s = max(min(s, hh), 0)
            t = max(min(t, hh), 0)
            mask[:, s:t] = 0
        mask = mask[off_h:off_h + h, off_w:off_w + w]
        if mode == 1:
            mask = 1 - mask
        out[b] = x[b] * mask[None, :, :]
    return out


if __name__ == "__main__":
    # GridMask(d1=4, d2=8, rotate=1, ratio=0.5, mode=0, prob=1.0), training mode.
    D1, D2, RATIO, MODE, PROB = 4, 8, 0.5, 0, 1.0
    N, C, H, W = 2, 4, 16, 16

    key = jax.random.PRNGKey(0)
    k_x, k_grid = jax.random.split(key)
    x = jax.random.normal(k_x, (N, C, H, W), dtype=jnp.float32)

    params, hh = make_gridmask_params(
        k_grid, N, H, W, d1=D1, d2=D2, ratio=RATIO, prob=PROB)

    y = gridmask_forward(x, params, mode=MODE)
    y = jax.block_until_ready(y)

    y_ref = _ref_gridmask(x, params, MODE, hh)
    np.testing.assert_allclose(np.asarray(y), y_ref, rtol=0, atol=0)

    print("KERNEL_OK")
</pallas_src>

<mosaic_0001>
module attributes {stable_mosaic.version = 11 : i64} {
  func.func @_gridmask_kernel(%arg0: i32, %arg1: i32, %arg2: i32, %arg3: memref<1x4x256xf32, #tpu.memory_space<vmem>>, %arg4: memref<1x1x256xi8, #tpu.memory_space<vmem>>, %arg5: memref<1x4x256xf32, #tpu.memory_space<vmem>>) attributes {dimension_semantics = [#tpu.dimension_semantics<parallel>, #tpu.dimension_semantics<parallel>, #tpu.dimension_semantics<parallel>], iteration_bounds = array<i64: 2, 1, 1>, scalar_prefetch = 0 : i64, scratch_operands = 0 : i64, tpu.core_type = #tpu.core_type<tc>, window_params = [{transform_indices = @transform_0, window_bounds = array<i64: 1, 4, 256>}, {transform_indices = @transform_1, window_bounds = array<i64: 1, 1, 256>}, {transform_indices = @transform_2, window_bounds = array<i64: 1, 4, 256>}]} {
    %c0 = arith.constant 0 : index
    %c0_0 = arith.constant 0 : index
    %c0_1 = arith.constant 0 : index
    %0 = vector.load %arg3[%c0, %c0_0, %c0_1] : memref<1x4x256xf32, #tpu.memory_space<vmem>>, vector<1x4x256xf32>
    %c0_2 = arith.constant 0 : index
    %c0_3 = arith.constant 0 : index
    %c0_4 = arith.constant 0 : index
    %1 = vector.load %arg4[%c0_2, %c0_3, %c0_4] : memref<1x1x256xi8, #tpu.memory_space<vmem>>, vector<1x1x256xi8>
    %2 = arith.sitofp %1 : vector<1x1x256xi8> to vector<1x1x256xf32>
    %3 = vector.broadcast %2 : vector<1x1x256xf32> to vector<1x4x256xf32>
    %4 = arith.mulf %0, %3 : vector<1x4x256xf32>
    %c0_5 = arith.constant 0 : index
    %c0_6 = arith.constant 0 : index
    %c0_7 = arith.constant 0 : index
    %5 = vector.load %arg5[%c0_5, %c0_6, %c0_7] : memref<1x4x256xf32, #tpu.memory_space<vmem>>, vector<1x4x256xf32>
    tpu.vector_store %arg5[%c0_5, %c0_6, %c0_7], %4 {strides = array<i32>} : memref<1x4x256xf32, #tpu.memory_space<vmem>>, vector<1x4x256xf32>,
    return
  }
  func.func @transform_0(%arg0: i32, %arg1: i32, %arg2: i32) -> (i32, i32, i32) {
    %c0_i32 = arith.constant 0 : i32
    return %arg0, %arg2, %arg1 : i32, i32, i32
  }
  func.func @transform_1(%arg0: i32, %arg1: i32, %arg2: i32) -> (i32, i32, i32) {
    %c0_i32 = arith.constant 0 : i32
    %c0_i32_0 = arith.constant 0 : i32
    return %arg0, %c0_i32, %arg1 : i32, i32, i32
  }
  func.func @transform_2(%arg0: i32, %arg1: i32, %arg2: i32) -> (i32, i32, i32) {
    %c0_i32 = arith.constant 0 : i32
    return %arg0, %arg2, %arg1 : i32, i32, i32
  }
}

</mosaic_0001>

<bundles_post_ra>
// kernel: tpu_custom_call.1
= control target key start
LH: loop header
LB: loop body
LE: loop exit
PB: predicated region body
PF: predicated region fallthrough
CT: control target
= control target key end

     0   :  { %7 = vsyncpa [#allocation3], 0  ;;  %s768_s0 = inlined_call_operand.hbm [shape: f32[2,4,256], index: 0, kind: input, shape index: {}]   ;;  %s769_s1 = inlined_call_operand.vmem [shape: s8[2,1,256], index: 1, kind: input, shape index: {}]   ;;  %s770_s2 = inlined_call_operand.hbm [shape: f32[2,4,256], index: 2, kind: output, shape index: {}]  }
   0x1   :  { %9 = vsyncpa [#allocation3 + $0x1], 0 }
   0x2   :  { %10 = vsyncpa [#allocation4], 0 }
   0x3   :  { %12 = vsyncpa [#allocation4 + $0x1], 0  ;;  %s591_s9 = smov 0   ;;  %s593_s10 = smov 0  }
   0x4   :  { %s595_s11 = smov 0   ;;  %s597_s12 = smov 0  }
   0x5   :  { %s599_s13 = smov 0   ;;  %s601_s14 = smov 0  }
   0x6 LB: > { %s380_s15 = sadd.s32 4294967295, %s572_s14   ;;  %s381_s16 = sadd.s32 4294967294, %s572_s14   ;;  %s572_s14 = sphi %s601_s14, %s18_s14   ;;  %s568_s13 = sphi %s599_s13, %s786_s13   ;;  %s564_s12 = sphi %s597_s12, %s785_s12   ;;  %s560_s11 = sphi %s595_s11, %s784_s11   ;;  %s556_s10 = sphi %s593_s10, %s783_s10   ;;  %s552_s9 = sphi %s591_s9, %s782_s9  }
   0x7   : > { %s37_s17 = sadd.s32 1, %s568_s13  ;;  %s48_s18 = sadd.s32 1, %s560_s11 }
   0x8   : > { %p39_p0 = scmp.ge.s32.totalorder %s37_s17, 2  ;;  %p55_p1 = scmp.ne.s32.totalorder %s560_s11, %s556_s10 }
   0x9   : > { %p56_p2 = scmp.eq.s32.totalorder %s572_s14, 0  ;;  %p61_p3 = scmp.ne.s32.totalorder %s556_s10, %s552_s9 }
   0xa   : > { %s788_s17 = smov (%p39_p0, %s37_s17), 0  ;;  %p62_p5 = scmp.eq.s32.totalorder %s380_s15, 0 }
   0xb   : > { %p632_p4 = por %p56_p2, %p55_p1  ;;  %s41_s20 = ssub.s32 %s568_s13, %s788_s17 }
   0xc   : > { %p117_p6 = scmp.eq.s32.totalorder %s380_s15, 1  ;;  %p46_p7 = scmp.eq.s32.totalorder %s41_s20, 0 }
   0xd   : > { %p638_p8 = por %p62_p5, %p61_p3  ;;  %p123_p10 = scmp.eq.s32.totalorder %s381_s16, 1 }
   0xe   : > { %p642_p9 = por %p117_p6, %p55_p1  ;;  %p410_p13 = scmp.lt.s32.totalorder %s572_s14, 2 }
   0xf   : > { %s647_s23 = scalar_select %p46_p7, %s560_s11, %s48_s18  }
  0x10   : > { %s774_s22 = scalar_select %p642_p9, 1, 0 }
  0x11   : > { %p649_p11 = por %p123_p10, %p61_p3  ;;  %s143_s25 = sand.u32 1, %s560_s11  }
  0x12   : > { %s384_s26 = sshll.u32 %s143_s25, 3  ;;  %s396_s27 = sshll.u32 %s568_s13, 7 }
  0x13   : > { %s775_s24 = scalar_select %p649_p11, 1, 0 }
  0x14   : > { %s660_s30 = scalar_lea.hbm %s768_s0, %s396_s27  ;;  %s147_s3 = scalar_lea.vmem [#allocation2], %s384_s26 }
  0x15   : > { %s159_s4 = sshll.u32 %s147_s3, 4  ;;  %p666_p0 = pnand %p410_p13, %p632_p4  ;;  %s662_s4 = int_to_ptr.vmem [resolvable:$true] %s159_s4 }
  0x16   : > { %s144_s6 = scalar_lea.sflag [#allocation3], %s143_s25  ;;  %s460_s7 = scalar_lea.hbm %s660_s30, 128 }
  0x17   : > { %p461_p3 = scmp.ne.s32.totalorder %s660_s30, %s460_s7  ;;  %p462_p5 = pneg %p666_p0 }
  0x18   : > { %s465_s16 = scalar_lea.hbm %s768_s0, 256  ;;  %p466_p4 = scmp.lt.u32.totalorder %s660_s30, %s768_s0 }
  0x19   : > { %p463_p6 = pnand %p462_p5, %p461_p3  ;;  %p467_p10 = scmp.lt.u32.totalorder %s465_s16, %s460_s7 }
  0x1a   : > { %p469_p12 = scmp.lt.u32.totalorder %s460_s7, %s660_s30 }
  0x1b   : > { %p464_p7 = pneg %p463_p6  ;;  %p468_p13 = por %p467_p10, %p466_p4 }
  0x1d   : > { %p470_p1 = por %p469_p12, %p468_p13 }
  0x1f   : > { %p471_p2 = pnand %p470_p1, %p464_p7 }
  0x21   : > { %474 = shalt.err (!%p471_p2)
}
  0x22   : > { %s475_s20 = scalar_lea.vmem %s662_s4, 128  ;;  %s574_s25 = smov [#allocation2]  }
  0x23   : > { %p476_p3 = scmp.ne.s32.totalorder %s662_s4, %s475_s20  ;;  %s480_s26 = sshll.u32 %s574_s25, 4  ;;  %s481_s26 = int_to_ptr.vmem [resolvable:$false] %s480_s26 }
  0x24   : > { %s482_s27 = scalar_lea.vmem %s481_s26, 256  ;;  %p483_p9 = scmp.lt.s32.totalorder %s662_s4, %s481_s26 }
  0x25   : > { %p478_p6 = pnand %p476_p3, %p462_p5  ;;  %p484_p4 = scmp.lt.s32.totalorder %s482_s27, %s475_s20 }
  0x27   : > { %p479_p11 = pneg %p478_p6  ;;  %p485_p10 = por %p484_p4, %p483_p9 }
  0x29   : > { %p486_p12 = pnand %p485_p10, %p479_p11 }
  0x2b   : > { %489 = shalt.err (!%p486_p12)
}
  0x2c   : > { %405 = dma.hbm_to_vmem [thread:$0]  (!%p666_p0), %s660_s30, 128, %s662_s4, %s144_s6  }
  0x2d   : > { %p777_p1 = scmp.lt.s32.totalorder %s572_s14, 3  ;;  %p778_p2 = scmp.ge.s32.totalorder %s572_s14, 1 }
  0x2f   : > { %p177_p5 = pnand %p778_p2, %p777_p1 }
  0x30   : > { %s702_s28 = sand.u32 (!%p177_p5), 1, %s556_s10  }
  0x31   : > { %180 = sbr.rel (%p177_p5) target bundleno = 90 (0x5a), region = 28  ;;  %s388_s29 = sshll.u32 (!%p177_p5), %s702_s28, 3 }
  0x32   : > { %s183_s3 = scalar_lea.sflag (!%p177_p5), [#allocation3], %s702_s28  ;;  %s186_s7 = scalar_lea.vmem (!%p177_p5), [#allocation2], %s388_s29 }
  0x38   : > { %543 = dma.done.wait (%p638_p8), %s183_s3, 128  }
  0x39   : > { %545 = vsyncadd (%p638_p8), %s183_s3, 4294967168  ;;  %p217_p9 = scmp.lt.s32.totalorder %s564_s12, 1  ;;  %v231_v0 = vlaneseq  ;;  %v226_v11 = vld [vmem:[%s186_s7] sm:$0xff]  ;;  %s214_s21 = scalar_lea.vmem [#allocation5], %s388_s29 }
  0x3a   : > { %s274_s15 = sshll.u32 %s214_s21, 4  ;;  %s397_s16 = sshll.u32 %s564_s12, 7  ;;  %s716_s15 = int_to_ptr.vmem [resolvable:$true] %s274_s15 }
  0x3b   : > { %s218_s30 = scalar_select %p217_p9, %s564_s12, 1  ;;  %v232_v1 = vshrl.u32 %v231_v0, 7 }
  0x3c   : > { %s721_s20 = scalar_lea.hbm %s770_s2, %s397_s16  ;;  %s256_s25 = scalar_lea.sflag [#allocation4], %s702_s28 }
  0x3d   : > { %s390_s4 = sshll.u32 %s218_s30, 1  ;;  %v233_v4 = vsub.s32 0, %v232_v1  ;;  %v237_v5 = vsub.s32 4, %v232_v1  ;;  %s490_s26 = scalar_lea.vmem %s716_s15, 128 }
  0x3e   : > { %s223_s8 = scalar_lea.vmem %s769_s1, %s390_s4  ;;  %p491_p8 = scmp.ne.s32.totalorder %s716_s15, %s490_s26 }
  0x3f   : > { %v227_v2 = vld [vmem:[%s223_s8] sm:$0x3]  ;;  %p779_p11 = scmp.ne.s32.totalorder %s774_s22, 0  ;;  %s575_s12 = smov [#allocation5]  }
  0x40   : > { %v228_v3 = vunpack.c.0.s8 %v227_v2  ;;  %s494_s27 = sshll.u32 %s575_s12, 4  ;;  %s495_s27 = int_to_ptr.vmem [resolvable:$false] %s494_s27 }
  0x41   : > { %p492_p0 = pnand %p491_p8, %p779_p11  ;;  %s496_s29 = scalar_lea.vmem %s495_s27, 256 }
  0x42   : > { %v229_v6 = vcvt.s32.f32 %v228_v3  ;;  %p497_p13 = scmp.lt.s32.totalorder %s716_s15, %s495_s27  ;;  %p498_p3 = scmp.lt.s32.totalorder %s496_s29, %s490_s26 }
  0x43   : > { %p493_p7 = pneg %p492_p0 }
  0x44   : > { %v234_v7 = vrot.slane %v229_v6, %v233_v4  ;;  %v238_v8 = vrot.slane %v229_v6, %v237_v5  ;;  %p499_p6 = por %p498_p3, %p497_p13 }
  0x46   : > { %v244_v9 = vrot.slane %v234_v7, %v233_v4  ;;  %v248_v10 = vrot.slane %v238_v8, %v233_v4  ;;  %p500_p4 = pnand %p499_p6, %p493_p7 }
  0x48   : > { %v251_v12 = vcombine.low %v244_v9, %v248_v10 }
  0x4a   : > { %v253_v13 = vmul.f32 %v251_v12, %v226_v11 }
  0x4c   : > { %254 = vst [vmem:[%s214_s21] sm:$0xff] %v253_v13 }
  0x4d   : > { %503 = shalt.err (!%p500_p4)
}
  0x4e   : > { %s504_s28 = scalar_lea.hbm %s721_s20, 128  ;;  %s508_s30 = scalar_lea.hbm %s770_s2, 256 }
  0x4f   : > { %p505_p10 = scmp.ne.s32.totalorder %s721_s20, %s504_s28  ;;  %p509_p2 = scmp.lt.u32.totalorder %s721_s20, %s770_s2 }
  0x50   : > { %p510_p5 = scmp.lt.u32.totalorder %s508_s30, %s504_s28  ;;  %p512_p8 = scmp.lt.u32.totalorder %s504_s28, %s721_s20 }
  0x51   : > { %p506_p12 = pnand %p505_p10, %p779_p11 }
  0x52   : > { %p511_p9 = por %p510_p5, %p509_p2 }
  0x53   : > { %p507_p1 = pneg %p506_p12 }
  0x54   : > { %p513_p0 = por %p512_p8, %p511_p9 }
  0x56   : > { %p514_p7 = pnand %p513_p0, %p507_p1 }
  0x58   : > { %517 = shalt.err (!%p514_p7)
}
  0x59   : > { %400 = dma.vmem_to_hbm [thread:$0]  (%p779_p11), %s716_s15, 128, %s721_s20, %s256_s25  }
  0x5a PF: > { %s286_s6 = sand.u32 1, %s552_s9   ;;  %p780_p13 = scmp.ne.s32.totalorder %s775_s24, 0 }
  0x5b   : > { %p781_p3 = scmp.ge.s32.totalorder %s572_s14, 2  ;;  %s287_s8 = scalar_lea.sflag [#allocation4], %s286_s6 }
  0x5d   : > { %p407_p6 = pnand %p781_p3, %p780_p13 }
  0x5f   : > { %547 = dma.done.wait (!%p407_p6), %s287_s8, 128  }
  0x60   : > { %549 = vsyncadd (!%p407_p6), %s287_s8, 4294967168  ;;  %s18_s14 = sadd.s32 1, %s572_s14   ;;  %s782_s9 = smov %s556_s10 }
  0x61   : > { %p15_p4 = scmp.ge.s32.totalorder %s18_s14, 4   ;;  %s783_s10 = smov %s560_s11 }
  0x62   : > { %s784_s11 = smov %s647_s23  ;;  %s785_s12 = smov %s568_s13 }
  0x63   : > { %s786_s13 = smov %s788_s17  ;;  %17 = sbr.rel (!%p15_p4) target bundleno = 6 (0x6), region = 76 }
  0x6a   :  { %292 = vsyncpa [#allocation3], 1 }
  0x6b   :  { %294 = vsyncpa [#allocation3 + $0x1], 1 }
  0x6c   :  { %295 = vsyncpa [#allocation4], 1 }
  0x6d   :  { %297 = vsyncpa [#allocation4 + $0x1], 1 }

</bundles_post_ra>
